<compile_context>
chip_gen: v7x
topology: tpu7x:2x2x1
jax: 0.10.0
libtpu: 0.0.40
codegen_flags: <defaults>
</compile_context>

<pallas_src>
import functools

import jax
import jax.numpy as jnp
from jax.experimental import pallas as pl
from jax.experimental.pallas import tpu as pltpu


def _round_up(n, m):
    return ((n + m - 1) // m) * m


def _pad2(a, rows, cols):
    r, c = a.shape
    return jnp.pad(a, ((0, rows - r), (0, cols - c)))


# --------------------------------------------------------------------------
# Kernels
# --------------------------------------------------------------------------

def make_actor_single_kernel(n_valid_rows, n_rows):
    """One forward pass on a whole-array (n_rows, F_pad) VMEM tile."""
    need_row_mask = n_rows > n_valid_rows

    def actor_kernel(x_ref, w1_ref, b1_ref, w2_ref, b2_ref, w3_ref, b3_ref, out_ref):
        x = x_ref[...]  # bf16 (n_rows, F_pad)

        h1 = jnp.dot(x, w1_ref[...], preferred_element_type=jnp.float32) + b1_ref[...]
        h1 = jnp.maximum(h1, 0.0)

        h2 = jnp.dot(h1.astype(w2_ref.dtype), w2_ref[...],
                     preferred_element_type=jnp.float32) + b2_ref[...]
        h2 = jnp.maximum(h2, 0.0)

        logits = jnp.dot(h2.astype(w3_ref.dtype), w3_ref[...],
                         preferred_element_type=jnp.float32) + b3_ref[...]

        # Softmax over dim 0 (batch axis), f32 path.  Padded rows are masked
        # out of the exponentials (not -inf logits) for robust numerics.
        m = jnp.max(logits, axis=0, keepdims=True)
        e = jnp.exp(logits - m)
        if need_row_mask:
            row = jax.lax.broadcasted_iota(jnp.int32, e.shape, 0)
            e = jnp.where(row < n_valid_rows, e, 0.0)
        s = jnp.sum(e, axis=0, keepdims=True)
        out_ref[...] = (e * pl.reciprocal(s, approx=True)).astype(out_ref.dtype)

    return actor_kernel


def make_actor_batched_kernel(n_valid_rows, n_rows, call_block, a_pad):
    """CB fused calls per grid step: x tile (CB, n_rows, F_pad)."""
    need_row_mask = n_rows > n_valid_rows
    cb = call_block

    def actor_kernel(x_ref, w1_ref, b1_ref, w2_ref, b2_ref, w3_ref, b3_ref, out_ref):
        # (CB, Bp, Fp) -> (CB*Bp, Fp): sublane-aligned merge (Bp % 16 == 0),
        # so this is a free view; the MXU now sees CB*Bp rows at once.
        x = x_ref[...].reshape(cb * n_rows, -1)  # bf16

        h1 = jnp.dot(x, w1_ref[...], preferred_element_type=jnp.float32) + b1_ref[...]
        h1 = jnp.maximum(h1, 0.0)

        h2 = jnp.dot(h1.astype(w2_ref.dtype), w2_ref[...],
                     preferred_element_type=jnp.float32) + b2_ref[...]
        h2 = jnp.maximum(h2, 0.0)

        logits = jnp.dot(h2.astype(w3_ref.dtype), w3_ref[...],
                         preferred_element_type=jnp.float32) + b3_ref[...]

        # Group-wise softmax: each call's n_rows rows form one dim-0 group.
        logits = logits.reshape(cb, n_rows, a_pad)
        m = jnp.max(logits, axis=1, keepdims=True)
        e = jnp.exp(logits - m)
        if need_row_mask:
            row = jax.lax.broadcasted_iota(jnp.int32, e.shape, 1)
            e = jnp.where(row < n_valid_rows, e, 0.0)
        s = jnp.sum(e, axis=1, keepdims=True)
        out_ref[...] = (e * pl.reciprocal(s, approx=True)).astype(out_ref.dtype)

    return actor_kernel


# --------------------------------------------------------------------------
# Jitted wrappers (parameters arrive pre-padded / pre-cast)
# --------------------------------------------------------------------------

@functools.partial(
    jax.jit, static_argnames=("n_valid_rows", "n_rows", "n_actions", "f_pad"))
def _actor_forward_padded(x, w1p, b1p, w2p, b2p, w3p, b3p, *,
                          n_valid_rows, n_rows, n_actions, f_pad):
    """Single forward: x (B, n_states).  Whole-array VMEM refs, no grid."""
    B, F = x.shape
    xp = jnp.pad(x.astype(jnp.bfloat16), ((0, n_rows - B), (0, f_pad - F)))

    vmem = pl.BlockSpec(memory_space=pltpu.MemorySpace.VMEM)
    out = pl.pallas_call(
        make_actor_single_kernel(n_valid_rows, n_rows),
        out_shape=jax.ShapeDtypeStruct((n_rows, w3p.shape[1]), jnp.float32),
        in_specs=[vmem] * 7,
        out_specs=vmem,
    )(xp, w1p, b1p, w2p, b2p, w3p, b3p)
    return out[:n_valid_rows, :n_actions]


@functools.partial(
    jax.jit,
    static_argnames=("n_valid_rows", "n_rows", "n_actions", "f_pad", "call_block"))
def _actor_forward_batched_padded(x, w1p, b1p, w2p, b2p, w3p, b3p, *,
                                  n_valid_rows, n_rows, n_actions, f_pad,
                                  call_block):
    """Many independent forward calls: x (N, B, n_states), CB calls per step."""
    N, B, F = x.shape
    assert N % call_block == 0
    xp = jnp.pad(x.astype(jnp.bfloat16),
                 ((0, 0), (0, n_rows - B), (0, f_pad - F)))

    f_p, h0_p = w1p.shape
    h1_p = w2p.shape[1]
    a_p = w3p.shape[1]
    cb = call_block

    out = pl.pallas_call(
        make_actor_batched_kernel(n_valid_rows, n_rows, cb, a_p),
        out_shape=jax.ShapeDtypeStruct((N, n_rows, a_p), jnp.float32),
        grid=(N // cb,),
        in_specs=[
            pl.BlockSpec((cb, n_rows, f_pad), lambda i: (i, 0, 0)),  # x streams
            pl.BlockSpec((f_p, h0_p), lambda i: (0, 0)),             # weights stay
            pl.BlockSpec((1, h0_p), lambda i: (0, 0)),               #   VMEM-resident
            pl.BlockSpec((h0_p, h1_p), lambda i: (0, 0)),
            pl.BlockSpec((1, h1_p), lambda i: (0, 0)),
            pl.BlockSpec((h1_p, a_p), lambda i: (0, 0)),
            pl.BlockSpec((1, a_p), lambda i: (0, 0)),
        ],
        out_specs=pl.BlockSpec((cb, n_rows, a_p), lambda i: (i, 0, 0)),
        compiler_params=pltpu.CompilerParams(
            dimension_semantics=("parallel",)),
    )(xp, w1p, b1p, w2p, b2p, w3p, b3p)
    return out[:, :n_valid_rows, :n_actions]


def _choose_call_block(n_calls, n_rows, max_fused_rows=1024):
    """Largest CB dividing n_calls with CB*Bp <= max_fused_rows and grid >= 2.

    max_fused_rows ~= 1024 keeps the per-step working set (bf16 x tile +
    f32 h1/h2/logits/out, plus double-buffered DMA tiles) in the low-MiB
    range -> safe on v7x's 64 MiB VMEM; grid >= 2 keeps both v7x TCs busy.
    """
    max_cb = max(1, min(n_calls, max_fused_rows // max(n_rows, 1)))
    if n_calls >= 2:
        max_cb = max(1, min(max_cb, n_calls // 2))
    for cb in range(max_cb, 0, -1):
        if n_calls % cb == 0:
            return cb
    return 1


# --------------------------------------------------------------------------
# "Module": pads/casts parameters ONCE at construction
# --------------------------------------------------------------------------

class ActorNetworkPallas:
    def __init__(self, w1, b1, w2, b2, w3, b3):
        n_states, h0 = w1.shape
        h1 = w2.shape[1]
        n_actions = w3.shape[1]
        self.n_states = n_states
        self.n_actions = n_actions

        self.f_pad = _round_up(n_states, 128)
        h0_pad = _round_up(h0, 128)
        h1_pad = _round_up(h1, 128)
        self.a_pad = _round_up(n_actions, 128)

        # Hoisted out of the per-call jitted path: pad + cast happens once.
        self.params = (
            _pad2(w1, self.f_pad, h0_pad).astype(jnp.bfloat16),
            _pad2(b1, 1, h0_pad).astype(jnp.float32),
            _pad2(w2, h0_pad, h1_pad).astype(jnp.bfloat16),
            _pad2(b2, 1, h1_pad).astype(jnp.float32),
            _pad2(w3, h1_pad, self.a_pad).astype(jnp.bfloat16),
            _pad2(b3, 1, self.a_pad).astype(jnp.float32),
        )

    def __call__(self, x):
        """x: (B, n_states) -> (B, n_actions) softmax over dim 0."""
        B = x.shape[0]
        n_rows = _round_up(max(B, 1), 16)   # 16-sublane pad for bf16 packing
        return _actor_forward_padded(
            x, *self.params,
            n_valid_rows=B, n_rows=n_rows,
            n_actions=self.n_actions, f_pad=self.f_pad)

    def forward_batched(self, x, max_fused_rows=1024):
        """x: (N, B, n_states) -> (N, B, n_actions); N independent calls."""
        N, B, _ = x.shape
        n_rows = _round_up(max(B, 1), 16)
        cb = _choose_call_block(N, n_rows, max_fused_rows)
        return _actor_forward_batched_padded(
            x, *self.params,
            n_valid_rows=B, n_rows=n_rows,
            n_actions=self.n_actions, f_pad=self.f_pad, call_block=cb)


# --------------------------------------------------------------------------
# References / init / test
# --------------------------------------------------------------------------

def init_linear(key, fan_in, fan_out):
    # PyTorch nn.Linear default init: U(-1/sqrt(fan_in), 1/sqrt(fan_in)),
    # stored pre-transposed as (in, out); bias as (1, out).
    kw, kb = jax.random.split(key)
    bound = 1.0 / jnp.sqrt(jnp.float32(fan_in))
    w = jax.random.uniform(kw, (fan_in, fan_out), jnp.float32, -bound, bound)
    b = jax.random.uniform(kb, (1, fan_out), jnp.float32, -bound, bound)
    return w, b


def reference_forward_f32(x, w1, b1, w2, b2, w3, b3):
    h1 = jnp.maximum(x @ w1 + b1, 0.0)
    h2 = jnp.maximum(h1 @ w2 + b2, 0.0)
    logits = h2 @ w3 + b3
    return jax.nn.softmax(logits, axis=0)


def reference_forward_bf16(x, w1, b1, w2, b2, w3, b3):
    bf = jnp.bfloat16
    h1 = jnp.maximum(
        jnp.dot(x.astype(bf), w1.astype(bf), preferred_element_type=jnp.float32) + b1, 0.0)
    h2 = jnp.maximum(
        jnp.dot(h1.astype(bf), w2.astype(bf), preferred_element_type=jnp.float32) + b2, 0.0)
    logits = jnp.dot(h2.astype(bf), w3.astype(bf), preferred_element_type=jnp.float32) + b3
    return jax.nn.softmax(logits, axis=0)


if __name__ == "__main__":
    # Small shapes consistent with ActorNetwork(n_actions, n_states, hidden_size)
    batch = 8
    n_states = 16
    hidden_size = (32, 32)
    n_actions = 8
    n_calls = 16   # independent forward passes for the batched path

    key = jax.random.PRNGKey(0)
    kx, kxb, k1, k2, k3 = jax.random.split(key, 5)

    x = jax.random.normal(kx, (batch, n_states), jnp.float32)
    x_batched = jax.random.normal(kxb, (n_calls, batch, n_states), jnp.float32)
    w1, b1 = init_linear(k1, n_states, hidden_size[0])
    w2, b2 = init_linear(k2, hidden_size[0], hidden_size[1])
    w3, b3 = init_linear(k3, hidden_size[1], n_actions)

    actor = ActorNetworkPallas(w1, b1, w2, b2, w3, b3)

    # --- single-call kernel ---
    out = jax.block_until_ready(actor(x))
    assert out.shape == (batch, n_actions)

    ref_bf16 = reference_forward_bf16(x, w1, b1, w2, b2, w3, b3)
    ref_f32 = reference_forward_f32(x, w1, b1, w2, b2, w3, b3)
    assert jnp.allclose(out, ref_bf16, atol=5e-3), "mismatch vs bf16-matched reference"
    assert jnp.allclose(out, ref_f32, atol=3e-2), "mismatch vs f32 reference"

    # --- batched (weights-resident, CB calls fused per grid step) kernel ---
    out_b = jax.block_until_ready(actor.forward_batched(x_batched))
    assert out_b.shape == (n_calls, batch, n_actions)

    ref_b = jax.vmap(lambda xx: reference_forward_bf16(xx, w1, b1, w2, b2, w3, b3))(x_batched)
    assert jnp.allclose(out_b, ref_b, atol=5e-3), "batched mismatch vs reference"

    print("KERNEL_OK")
</pallas_src>

<mosaic_0001>
module attributes {stable_mosaic.version = 11 : i64} {
  func.func @actor_kernel(%arg0: memref<16x128xbf16, #tpu.memory_space<vmem>>, %arg1: memref<128x128xbf16, #tpu.memory_space<vmem>>, %arg2: memref<1x128xf32, #tpu.memory_space<vmem>>, %arg3: memref<128x128xbf16, #tpu.memory_space<vmem>>, %arg4: memref<1x128xf32, #tpu.memory_space<vmem>>, %arg5: memref<128x128xbf16, #tpu.memory_space<vmem>>, %arg6: memref<1x128xf32, #tpu.memory_space<vmem>>, %arg7: memref<16x128xf32, #tpu.memory_space<vmem>>) attributes {dimension_semantics = [], scalar_prefetch = 0 : i64, scratch_operands = 0 : i64, tpu.core_type = #tpu.core_type<tc>} {
    %c0 = arith.constant 0 : index
    %c0_0 = arith.constant 0 : index
    %0 = vector.load %arg0[%c0, %c0_0] : memref<16x128xbf16, #tpu.memory_space<vmem>>, vector<16x128xbf16>
    %c0_1 = arith.constant 0 : index
    %c0_2 = arith.constant 0 : index
    %1 = vector.load %arg1[%c0_1, %c0_2] : memref<128x128xbf16, #tpu.memory_space<vmem>>, vector<128x128xbf16>
    %cst = arith.constant dense<0.000000e+00> : vector<16x128xf32>
    %2 = tpu.matmul %0, %1, %cst {dimension_numbers = #tpu.dot_dimension_numbers<[1], [0], [0], [1], [0, 0, 1, 1], [], []>} : vector<16x128xbf16>, vector<128x128xbf16>, vector<16x128xf32> -> vector<16x128xf32>
    %c0_3 = arith.constant 0 : index
    %c0_4 = arith.constant 0 : index
    %3 = vector.load %arg2[%c0_3, %c0_4] : memref<1x128xf32, #tpu.memory_space<vmem>>, vector<1x128xf32>
    %4 = vector.broadcast %3 : vector<1x128xf32> to vector<16x128xf32>
    %5 = arith.addf %2, %4 : vector<16x128xf32>
    %cst_5 = arith.constant 0.000000e+00 : f32
    %6 = vector.broadcast %cst_5 : f32 to vector<16x128xf32>
    %7 = arith.maximumf %5, %6 : vector<16x128xf32>
    %8 = arith.truncf %7 : vector<16x128xf32> to vector<16x128xbf16>
    %c0_6 = arith.constant 0 : index
    %c0_7 = arith.constant 0 : index
    %9 = vector.load %arg3[%c0_6, %c0_7] : memref<128x128xbf16, #tpu.memory_space<vmem>>, vector<128x128xbf16>
    %cst_8 = arith.constant dense<0.000000e+00> : vector<16x128xf32>
    %10 = tpu.matmul %8, %9, %cst_8 {dimension_numbers = #tpu.dot_dimension_numbers<[1], [0], [0], [1], [0, 0, 1, 1], [], []>} : vector<16x128xbf16>, vector<128x128xbf16>, vector<16x128xf32> -> vector<16x128xf32>
    %c0_9 = arith.constant 0 : index
    %c0_10 = arith.constant 0 : index
    %11 = vector.load %arg4[%c0_9, %c0_10] : memref<1x128xf32, #tpu.memory_space<vmem>>, vector<1x128xf32>
    %12 = vector.broadcast %11 : vector<1x128xf32> to vector<16x128xf32>
    %13 = arith.addf %10, %12 : vector<16x128xf32>
    %cst_11 = arith.constant 0.000000e+00 : f32
    %14 = vector.broadcast %cst_11 : f32 to vector<16x128xf32>
    %15 = arith.maximumf %13, %14 : vector<16x128xf32>
    %16 = arith.truncf %15 : vector<16x128xf32> to vector<16x128xbf16>
    %c0_12 = arith.constant 0 : index
    %c0_13 = arith.constant 0 : index
    %17 = vector.load %arg5[%c0_12, %c0_13] : memref<128x128xbf16, #tpu.memory_space<vmem>>, vector<128x128xbf16>
    %cst_14 = arith.constant dense<0.000000e+00> : vector<16x128xf32>
    %18 = tpu.matmul %16, %17, %cst_14 {dimension_numbers = #tpu.dot_dimension_numbers<[1], [0], [0], [1], [0, 0, 1, 1], [], []>} : vector<16x128xbf16>, vector<128x128xbf16>, vector<16x128xf32> -> vector<16x128xf32>
    %c0_15 = arith.constant 0 : index
    %c0_16 = arith.constant 0 : index
    %19 = vector.load %arg6[%c0_15, %c0_16] : memref<1x128xf32, #tpu.memory_space<vmem>>, vector<1x128xf32>
    %20 = vector.broadcast %19 : vector<1x128xf32> to vector<16x128xf32>
    %21 = arith.addf %18, %20 : vector<16x128xf32>
    %cst_17 = arith.constant dense<0xFF800000> : vector<128xf32>
    %22 = vector.multi_reduction <maximumf>, %21, %cst_17 [0] : vector<16x128xf32> to vector<128xf32>
    %23 = vector.shape_cast %22 : vector<128xf32> to vector<1x128xf32>
    %24 = vector.broadcast %23 : vector<1x128xf32> to vector<16x128xf32>
    %25 = arith.subf %21, %24 : vector<16x128xf32>
    %26 = math.exp %25 : vector<16x128xf32>
    %27 = tpu.iota {dimensions = array<i32: 0>} : vector<16x128xi32>
    %c8_i32 = arith.constant 8 : i32
    %28 = vector.broadcast %c8_i32 : i32 to vector<16x128xi32>
    %29 = arith.cmpi slt, %27, %28 : vector<16x128xi32>
    %cst_18 = arith.constant 0.000000e+00 : f32
    %30 = vector.broadcast %cst_18 : f32 to vector<16x128xf32>
    %31 = arith.select %29, %26, %30 : vector<16x128xi1>, vector<16x128xf32>
    %cst_19 = arith.constant dense<0.000000e+00> : vector<128xf32>
    %32 = vector.multi_reduction <add>, %31, %cst_19 [0] : vector<16x128xf32> to vector<128xf32>
    %33 = vector.shape_cast %32 : vector<128xf32> to vector<1x128xf32>
    %34 = tpu.reciprocal %33 {approx = true} : vector<1x128xf32> -> vector<1x128xf32>
    %35 = vector.broadcast %34 : vector<1x128xf32> to vector<16x128xf32>
    %36 = arith.mulf %31, %35 : vector<16x128xf32>
    %c0_20 = arith.constant 0 : index
    %c0_21 = arith.constant 0 : index
    %37 = vector.load %arg7[%c0_20, %c0_21] : memref<16x128xf32, #tpu.memory_space<vmem>>, vector<16x128xf32>
    tpu.vector_store %arg7[%c0_20, %c0_21], %36 {strides = array<i32>} : memref<16x128xf32, #tpu.memory_space<vmem>>, vector<16x128xf32>,
    return
  }
}

</mosaic_0001>

<bundles_post_ra>
// kernel: _actor_forward_padded.1
= control target key start
LH: loop header
LB: loop body
LE: loop exit
PB: predicated region body
PF: predicated region fallthrough
CT: control target
= control target key end

     0   :  { %12 = vsyncpa [#allocation3], 0  ;;  %s824_s0 = inlined_call_operand.vmem [shape: bf16[16,128], index: 0, kind: input, shape index: {}]   ;;  %s825_s1 = inlined_call_operand.hbm [shape: bf16[128,128], index: 1, kind: input, shape index: {}]   ;;  %s826_s2 = inlined_call_operand.vmem [shape: f32[1,128], index: 2, kind: input, shape index: {}]   ;;  %s827_s3 = inlined_call_operand.hbm [shape: bf16[128,128], index: 3, kind: input, shape index: {}]   ;;  %s828_s4 = inlined_call_operand.vmem [shape: f32[1,128], index: 4, kind: input, shape index: {}]   ;;  %s829_s5 = inlined_call_operand.hbm [shape: bf16[128,128], index: 5, kind: input, shape index: {}]   ;;  %s830_s6 = inlined_call_operand.vmem [shape: f32[1,128], index: 6, kind: input, shape index: {}]   ;;  %s831_s7 = inlined_call_operand.vmem [shape: f32[16,128], index: 7, kind: output, shape index: {}]  }
   0x1   :  { %13 = vsyncpa [#allocation5], 0  ;;  %s677_s24 = smov [#allocation4]   ;;  %s678_s26 = smov [#allocation2]  }
   0x2   :  { %s35_s25 = sshll.u32 %s677_s24, 4  ;;  %s21_s27 = sshll.u32 %s678_s26, 4  ;;  %s36_s25 = int_to_ptr.vmem [resolvable:$true] %s35_s25  ;;  %s724_s27 = int_to_ptr.vmem [resolvable:$true] %s21_s27 }
   0x3   :  { %s607_s30 = scalar_lea.hbm %s827_s3, 1024 }
   0x4   :  { %p608_p0 = scmp.ne.s32.totalorder %s827_s3, %s607_s30  ;;  %p611_p1 = scmp.lt.u32.totalorder %s607_s30, %s827_s3 }
   0x6   :  { %p613_p2 = pnand %p611_p1, %p608_p0 }
   0x8   :  { %616 = shalt.err (!%p613_p2)
}
   0x9   :  { %s617_s12 = scalar_lea.vmem %s36_s25, 1024  ;;  %p622_p4 = scmp.lt.s32.totalorder %s36_s25, %s36_s25 }
   0xa   :  { %p618_p3 = scmp.ne.s32.totalorder %s36_s25, %s617_s12  ;;  %p623_p5 = scmp.lt.s32.totalorder %s617_s12, %s617_s12 }
   0xc   :  { %p624_p6 = por %p623_p5, %p622_p4 }
   0xe   :  { %p625_p7 = pnand %p624_p6, %p618_p3 }
  0x10   :  { %628 = shalt.err (!%p625_p7)
}
  0x11   :  { %s679_s13 = smov 64   ;;  %s680_s14 = smov 4  }
  0x12   :  { %41 = dma.hbm_to_vmem [thread:$0]  %s827_s3, 1024, %s36_s25, [#allocation5], %s679_s13, %s679_s13, %s680_s14  }
  0x13   :  { %s629_s19 = scalar_lea.hbm %s825_s1, 1024 }
  0x14   :  { %p630_p8 = scmp.ne.s32.totalorder %s825_s1, %s629_s19  ;;  %p633_p9 = scmp.lt.u32.totalorder %s629_s19, %s825_s1 }
  0x16   :  { %p635_p10 = pnand %p633_p9, %p630_p8 }
  0x18   :  { %638 = shalt.err (!%p635_p10)
}
  0x19   :  { %s639_s24 = scalar_lea.vmem %s724_s27, 1024  ;;  %p644_p12 = scmp.lt.s32.totalorder %s724_s27, %s724_s27 }
  0x1a   :  { %p640_p11 = scmp.ne.s32.totalorder %s724_s27, %s639_s24  ;;  %p645_p13 = scmp.lt.s32.totalorder %s639_s24, %s639_s24 }
  0x1c   :  { %p646_p0 = por %p645_p13, %p644_p12 }
  0x1e   :  { %p647_p1 = pnand %p646_p0, %p640_p11 }
  0x20   :  { %650 = shalt.err (!%p647_p1)
}
  0x21   :  { %27 = dma.hbm_to_vmem [thread:$0]  %s825_s1, 1024, %s724_s27, [#allocation3], %s679_s13, %s679_s13, %s680_s14  }
  0x22   :  { %s681_s26 = smov [#allocation6]   ;;  %s651_s8 = scalar_lea.hbm %s829_s5, 1024 }
  0x23   :  { %s49_s28 = sshll.u32 %s681_s26, 4  ;;  %p652_p2 = scmp.ne.s32.totalorder %s829_s5, %s651_s8  ;;  %s50_s28 = int_to_ptr.vmem [resolvable:$true] %s49_s28 }
  0x24   :  { %p655_p3 = scmp.lt.u32.totalorder %s651_s8, %s829_s5 }
  0x26   :  { %p657_p4 = pnand %p655_p3, %p652_p2 }
  0x28   :  { %660 = shalt.err (!%p657_p4)
}
  0x29   :  { %s661_s15 = scalar_lea.vmem %s50_s28, 1024  ;;  %p666_p6 = scmp.lt.s32.totalorder %s50_s28, %s50_s28 }
  0x2a   :  { %p662_p5 = scmp.ne.s32.totalorder %s50_s28, %s661_s15  ;;  %p667_p7 = scmp.lt.s32.totalorder %s661_s15, %s661_s15 }
  0x2c   :  { %p668_p8 = por %p667_p7, %p666_p6 }
  0x2e   :  { %p669_p9 = pnand %p668_p8, %p662_p5 }
  0x30   :  { %672 = shalt.err (!%p669_p9)
}
  0x31   :  { %55 = dma.hbm_to_vmem [thread:$0]  %s829_s5, 1024, %s50_s28, [#allocation5], %s679_s13, %s679_s13, %s680_s14  }
  0x32   :  { %673 = dma.done.wait [#allocation3], 1024  }
  0x33   :  { %674 = vsyncadd [#allocation3], 4294966272 }
  0x34   :  { %675 = dma.done.wait [#allocation5], 2048  }
  0x35   :  { %676 = vsyncadd [#allocation5], 4294965248  ;;  %v682_v0 = vmov 0.0   ;;  %vm683_vm0 = vmmov 0   ;;  %v578_v1 = vld [vmem:[#allocation2] sm:$0xff]   ;;  %v579_v2 = vld [vmem:[#allocation2 + $0x8] sm:$0xff]  }
  0x36   :  { %511 = vmatprep.subr.bf16.mxu0 %v682_v0  ;;  %527 = vmatprep.mubr.msk.bf16.mxu0 %vm683_vm0, %v682_v0  ;;  %v580_v3 = vld [vmem:[#allocation2 + $0x10] sm:$0xff]   ;;  %v587_v4 = vld [vmem:[#allocation4] sm:$0xff]   ;;  %v581_v5 = vld [vmem:[#allocation2 + $0x18] sm:$0xff]  }
  0x37   :  { %531 = vmatprep.subr.bf16.mxu1 %v682_v0  ;;  %547 = vmatprep.mubr.msk.bf16.mxu1 %vm683_vm0, %v682_v0  ;;  %v588_v6 = vld [vmem:[#allocation4 + $0x8] sm:$0xff]   ;;  %v582_v7 = vld [vmem:[#allocation2 + $0x20] sm:$0xff]   ;;  %v589_v8 = vld [vmem:[#allocation4 + $0x10] sm:$0xff]  }
  0x38   :  { %512 = vmatpush3.bf16.msra.mxu0 %v578_v1  ;;  %532 = vmatpush3.bf16.msra.mxu1 %v587_v4  ;;  %v583_v9 = vld [vmem:[#allocation2 + $0x28] sm:$0xff]   ;;  %v590_v10 = vld [vmem:[#allocation4 + $0x18] sm:$0xff]   ;;  %v584_v11 = vld [vmem:[#allocation2 + $0x30] sm:$0xff]  }
  0x39   :  { %513 = vmatprep.subr.bf16.mxu0 %v682_v0  ;;  %533 = vmatprep.subr.bf16.mxu1 %v682_v0  ;;  %v591_v12 = vld [vmem:[#allocation4 + $0x20] sm:$0xff]   ;;  %v585_v13 = vld [vmem:[#allocation2 + $0x38] sm:$0xff]   ;;  %v592_v14 = vld [vmem:[#allocation4 + $0x28] sm:$0xff]  }
  0x3a   :  { %v586_v15 = vld [vmem:[%s824_s0] sm:$0xff]   ;;  %v593_v16 = vld [vmem:[#allocation4 + $0x30] sm:$0xff]   ;;  %v594_v17 = vld [vmem:[#allocation4 + $0x38] sm:$0xff]  }
  0x3b   :  { %v595_v18 = vld [vmem:[#allocation6] sm:$0xff]   ;;  %v596_v19 = vld [vmem:[#allocation6 + $0x8] sm:$0xff]   ;;  %v597_v20 = vld [vmem:[#allocation6 + $0x10] sm:$0xff]  }
  0x3c   :  { %514 = vmatpush3.bf16.msra.mxu0 %v579_v2  ;;  %534 = vmatpush3.bf16.msra.mxu1 %v588_v6  ;;  %v598_v21 = vld [vmem:[#allocation6 + $0x18] sm:$0xff]   ;;  %v599_v22 = vld [vmem:[#allocation6 + $0x20] sm:$0xff]   ;;  %v600_v23 = vld [vmem:[#allocation6 + $0x28] sm:$0xff]  }
  0x3d   :  { %515 = vmatprep.subr.bf16.mxu0 %v682_v0  ;;  %535 = vmatprep.subr.bf16.mxu1 %v682_v0  ;;  %v456_v24 = vld [vmem:[%s826_s2] ss:$0 sm:$0xff]  ;;  %v601_v34 = vld [vmem:[#allocation6 + $0x30] sm:$0xff]   ;;  %v602_v35 = vld [vmem:[#allocation6 + $0x38] sm:$0xff]  }
  0x3e   :  { %v466_v36 = vld [vmem:[%s828_s4] ss:$0 sm:$0xff] }
  0x3f   :  { %v475_v46 = vld [vmem:[%s830_s6] ss:$0 sm:$0xff] }
  0x40   :  { %516 = vmatpush3.bf16.msra.mxu0 %v580_v3  ;;  %536 = vmatpush3.bf16.msra.mxu1 %v589_v8 }
  0x41   :  { %517 = vmatprep.subr.bf16.mxu0 %v682_v0  ;;  %537 = vmatprep.subr.bf16.mxu1 %v682_v0 }
  0x44   :  { %518 = vmatpush3.bf16.msra.mxu0 %v581_v5  ;;  %538 = vmatpush3.bf16.msra.mxu1 %v590_v10 }
  0x45   :  { %519 = vmatprep.subr.bf16.mxu0 %v682_v0  ;;  %539 = vmatprep.subr.bf16.mxu1 %v682_v0 }
  0x48   :  { %520 = vmatpush3.bf16.msra.mxu0 %v582_v7  ;;  %540 = vmatpush3.bf16.msra.mxu1 %v591_v12 }
  0x49   :  { %521 = vmatprep.subr.bf16.mxu0 %v682_v0  ;;  %541 = vmatprep.subr.bf16.mxu1 %v682_v0 }
  0x4c   :  { %522 = vmatpush3.bf16.msra.mxu0 %v583_v9  ;;  %542 = vmatpush3.bf16.msra.mxu1 %v592_v14 }
  0x4d   :  { %523 = vmatprep.subr.bf16.mxu0 %v682_v0  ;;  %543 = vmatprep.subr.bf16.mxu1 %v682_v0 }
  0x50   :  { %524 = vmatpush3.bf16.msra.mxu0 %v584_v11  ;;  %544 = vmatpush3.bf16.msra.mxu1 %v593_v16 }
  0x51   :  { %525 = vmatprep.subr.bf16.mxu0 %v682_v0  ;;  %545 = vmatprep.subr.bf16.mxu1 %v682_v0 }
  0x54   :  { %526 = vmatpush3.bf16.msra.mxu0 %v585_v13  ;;  %546 = vmatpush3.bf16.msra.mxu1 %v594_v17 }
  0x55   :  { %551 = vmatprep.subr.bf16.mxu0 %v682_v0 }
  0x57   :  { %528 = vmatmul.mubr.bf16.vlgmr.msra.gmra.mrb[0].mxu0 %v586_v15 }
  0x58   :  { %567 = vmatprep.mubr.msk.bf16.mxu0 %vm683_vm0, %v682_v0  ;;  %552 = vmatpush3.bf16.msra.mxu0 %v595_v18 }
  0x59   :  { %553 = vmatprep.subr.bf16.mxu0 %v682_v0 }
  0x5c   :  { %554 = vmatpush3.bf16.msra.mxu0 %v596_v19 }
  0x5d   :  { %555 = vmatprep.subr.bf16.mxu0 %v682_v0 }
  0x60   :  { %556 = vmatpush3.bf16.msra.mxu0 %v597_v20 }
  0x61   :  { %557 = vmatprep.subr.bf16.mxu0 %v682_v0 }
  0x64   :  { %558 = vmatpush3.bf16.msra.mxu0 %v598_v21 }
  0x65   :  { %559 = vmatprep.subr.bf16.mxu0 %v682_v0 }
  0x68   :  { %560 = vmatpush3.bf16.msra.mxu0 %v599_v22 }
  0x69   :  { %561 = vmatprep.subr.bf16.mxu0 %v682_v0 }
  0x6c   :  { %562 = vmatpush3.bf16.msra.mxu0 %v600_v23 }
  0x6d   :  { %563 = vmatprep.subr.bf16.mxu0 %v682_v0 }
  0x70   :  { %564 = vmatpush3.bf16.msra.mxu0 %v601_v34 }
  0x71   :  { %565 = vmatprep.subr.bf16.mxu0 %v682_v0 }
  0x74   :  { %566 = vmatpush3.bf16.msra.mxu0 %v602_v35 }
 0x12a   :  { %v181_v25 = vpop.f32.mrb[0].mxu0 }
 0x12b   :  { %v182_v26 = vadd.f32 %v456_v24, %v181_v25  ;;  %v529_v27 = vpop.f32.mrb[1].mxu0 }
 0x12c   :  { %v184_v28 = vpop.f32.mrb[2].mxu0 }
 0x12d   :  { %v185_v29 = vadd.f32 %v456_v24, %v184_v28  ;;  %v530_v30 = vpop.f32.mrb[3].mxu0  ;;  %v188_v31 = vmax.f32 %v182_v26, 0.0 }
 0x12f   :  { %v189_v32 = vmax.f32 %v185_v29, 0.0 }
 0x131   :  { %v190_v33 = vpack.c.bf16 %v189_v32, %v188_v31 }
 0x133   :  { %548 = vmatmul.mubr.bf16.vlgmr.msra.gmra.mrb[0].mxu1 %v190_v33 }
 0x206   :  { %v296_v37 = vpop.f32.mrb[0].mxu1 }
 0x207   :  { %v297_v38 = vadd.f32 %v466_v36, %v296_v37  ;;  %v549_v39 = vpop.f32.mrb[1].mxu1 }
 0x208   :  { %v299_v40 = vpop.f32.mrb[2].mxu1 }
 0x209   :  { %v300_v41 = vadd.f32 %v466_v36, %v299_v40  ;;  %v550_v42 = vpop.f32.mrb[3].mxu1  ;;  %v303_v43 = vmax.f32 %v297_v38, 0.0 }
 0x20b   :  { %v304_v44 = vmax.f32 %v300_v41, 0.0 }
 0x20d   :  { %v305_v45 = vpack.c.bf16 %v304_v44, %v303_v43 }
 0x20f   :  { %568 = vmatmul.mubr.bf16.vlgmr.msra.gmra.mrb[4].mxu0 %v305_v45 }
 0x2e2   :  { %v411_v47 = vpop.f32.mrb[4].mxu0 }
 0x2e3   :  { %v569_v48 = vpop.f32.mrb[5].mxu0  ;;  %v412_v50 = vadd.f32 %v475_v46, %v411_v47 }
 0x2e4   :  { %v414_v49 = vpop.f32.mrb[6].mxu0 }
 0x2e5   :  { %v415_v51 = vadd.f32 %v475_v46, %v414_v49  ;;  %v570_v52 = vpop.f32.mrb[7].mxu0 }
 0x2e7   :  { %v418_v53 = vmax.f32 %v412_v50, %v415_v51 }
 0x2e9   :  { %v419_v54 = vrot.slane %v418_v53, 4 }
 0x2eb   :  { %v420_v55 = vmax.f32 %v418_v53, %v419_v54 }
 0x2ed   :  { %v421_v56 = vrot.slane %v420_v55, 2 }
 0x2ef   :  { %v422_v57 = vmax.f32 %v420_v55, %v421_v56 }
 0x2f1   :  { %v423_v58 = vrot.slane %v422_v57, 1 }
 0x2f3   :  { %v424_v59 = vmax.f32 %v422_v57, %v423_v58 }
 0x2f5   :  { %v425_v60 = vsub.f32 %v412_v50, %v424_v59 }
 0x2f7   :  { %v427_v61 = vmul.f32 1.442695, %v425_v60 }
 0x2f9   :  { %603 = vpow2.f32 %v427_v61 }
 0x303   :  { %v604_v62 = vpop.eup %603 }
 0x304   :  { %v439_v63 = vrot.slane %v604_v62, 4 }
 0x306   :  { %v440_v0 = vadd.f32 %v604_v62, %v439_v63 }
 0x308   :  { %v441_v1 = vrot.slane %v440_v0, 2 }
 0x30a   :  { %v442_v2 = vadd.f32 %v441_v1, %v440_v0 }
 0x30c   :  { %v443_v3 = vrot.slane %v442_v2, 1 }
 0x30e   :  { %v444_v4 = vadd.f32 %v443_v3, %v442_v2 }
 0x310   :  { %605 = vrcp.f32 %v444_v4 }
 0x31a   :  { %v606_v5 = vpop.eup %605 }
 0x31b   :  { %v446_v6 = vmul.f32 %v606_v5, %v604_v62  ;;  %v447_v7 = vmul.f32 0.0, %v606_v5 }
 0x31d   :  { %448 = vst [vmem:[%s831_s7] sm:$0xff] %v446_v6  ;;  %449 = vst [vmem:[%s831_s7 + $0x8] sm:$0xff] %v447_v7 }
 0x31e   :  { %454 = vsyncpa [#allocation3], 1 }
 0x31f   :  { %455 = vsyncpa [#allocation5], 1 }

</bundles_post_ra>
